<compile_context>
chip_gen: v7x
topology: tpu7x:2x2x1
jax: 0.10.0
libtpu: 0.0.40
codegen_flags: <defaults>
</compile_context>

<pallas_src>
from functools import partial

import jax
import jax.numpy as jnp
from jax.experimental import pallas as pl
from jax.experimental.pallas import tpu as pltpu

LANE = 128
NEG_BIG = -1e30  # padded-class bias -> exp() underflows to exactly 0


def _round_up(n, m):
    return ((n + m - 1) // m) * m


def _mlp_softmax_kernel(x_ref, w_ref, b_ref, o_ref):
    # x_ref: (TB, Kp) bf16
    # w_ref: (Kp + 2*Hp, Hp) bf16  = [W1p ; W2p ; W3p]
    # b_ref: (8, Hp) f32           (rows 0..2 = b1p, b2p, b3p)
    # o_ref: (TB, Hp) f32          (lane-dense output slab)
    kp = x_ref.shape[1]
    hp = w_ref.shape[1]

    x = x_ref[...]                                  # bf16, no cast needed
    w1 = w_ref[0:kp, :]
    w2 = w_ref[kp:kp + hp, :]
    w3 = w_ref[kp + hp:kp + 2 * hp, :]
    b = b_ref[...]                                  # (8, Hp) f32
    b1, b2, b3 = b[0:1, :], b[1:2, :], b[2:3, :]

    # Layer 1: Linear + ReLU   (Dropout p=0.5 -> identity in eval mode)
    h1 = jnp.dot(x, w1, preferred_element_type=jnp.float32) + b1
    h1 = jnp.maximum(h1, 0.0)

    # Layer 2: Linear + ReLU   (Dropout p=0.5 -> identity in eval mode)
    h2 = jnp.dot(h1.astype(jnp.bfloat16), w2, preferred_element_type=jnp.float32) + b2
    h2 = jnp.maximum(h2, 0.0)

    # Layer 3: Linear -> logits (padded class columns carry bias -1e30)
    logits = jnp.dot(h2.astype(jnp.bfloat16), w3, preferred_element_type=jnp.float32) + b3

    # Numerically stable softmax over the (padded) class lanes.
    m = jnp.max(logits, axis=-1, keepdims=True)
    e = jnp.exp(logits - m)
    denom = jnp.sum(e, axis=-1, keepdims=True)
    o_ref[...] = (e * pl.reciprocal(denom, approx=True)).astype(o_ref.dtype)


def pack_params(params):
    """Pack the 6 Linear params into 2 lane-padded operands (bf16 weights, f32 biases)."""
    w1, b1 = params["w1"], params["b1"]
    w2, b2 = params["w2"], params["b2"]
    w3, b3 = params["w3"], params["b3"]
    num_mrmr, num_hidden = w1.shape
    num_class = w3.shape[1]

    kp = _round_up(num_mrmr, 8)
    hp = _round_up(max(num_hidden, num_class), LANE)

    w1p = jnp.zeros((kp, hp), jnp.float32).at[:num_mrmr, :num_hidden].set(w1)
    w2p = jnp.zeros((hp, hp), jnp.float32).at[:num_hidden, :num_hidden].set(w2)
    w3p = jnp.zeros((hp, hp), jnp.float32).at[:num_hidden, :num_class].set(w3)
    w_packed = jnp.concatenate([w1p, w2p, w3p], axis=0).astype(jnp.bfloat16)

    b_packed = jnp.zeros((8, hp), jnp.float32)
    b_packed = b_packed.at[0, :num_hidden].set(b1.reshape(-1))
    b_packed = b_packed.at[1, :num_hidden].set(b2.reshape(-1))
    b_packed = b_packed.at[2, :].set(NEG_BIG)
    b_packed = b_packed.at[2, :num_class].set(b3.reshape(-1))
    return w_packed, b_packed


@partial(jax.jit, static_argnames=("num_class", "block_b"))
def mrmr_classifier_forward(x, w_packed, b_packed, *, num_class, block_b=256):
    """x: [B, num_mrmr] float32 -> [B, num_class] float32 softmax probabilities."""
    assert block_b % 8 == 0
    B, num_mrmr = x.shape
    hp = w_packed.shape[1]
    kp = w_packed.shape[0] - 2 * hp

    x = x.astype(jnp.bfloat16)
    if kp != num_mrmr:
        x = jnp.pad(x, ((0, 0), (0, kp - num_mrmr)))

    tb = min(block_b, _round_up(B, 8))
    bp = _round_up(B, tb)
    if bp != B:
        x = jnp.pad(x, ((0, bp - B), (0, 0)))

    out = pl.pallas_call(
        _mlp_softmax_kernel,
        out_shape=jax.ShapeDtypeStruct((bp, hp), jnp.float32),
        grid=(bp // tb,),
        in_specs=[
            pl.BlockSpec((tb, kp), lambda i: (i, 0)),
            pl.BlockSpec(w_packed.shape, lambda i: (0, 0)),   # resident weights
            pl.BlockSpec(b_packed.shape, lambda i: (0, 0)),   # resident biases
        ],
        out_specs=pl.BlockSpec((tb, hp), lambda i: (i, 0)),
        compiler_params=pltpu.CompilerParams(dimension_semantics=("parallel",)),
    )(x, w_packed, b_packed)

    return out[:B, :num_class]


def init_params(key, num_class, num_mrmr, num_hidden):
    """Match PyTorch _init_weight: weight ~ N(0, 0.01), bias = 0.1."""
    k1, k2, k3 = jax.random.split(key, 3)
    std = 0.01
    return {
        "w1": jax.random.normal(k1, (num_mrmr, num_hidden), jnp.float32) * std,
        "b1": jnp.full((1, num_hidden), 0.1, jnp.float32),
        "w2": jax.random.normal(k2, (num_hidden, num_hidden), jnp.float32) * std,
        "b2": jnp.full((1, num_hidden), 0.1, jnp.float32),
        "w3": jax.random.normal(k3, (num_hidden, num_class), jnp.float32) * std,
        "b3": jnp.full((1, num_class), 0.1, jnp.float32),
    }


def _reference_forward(x, p):
    # Mirrors the kernel's mixed precision (bf16 MXU operands, f32 accumulate/epilogue).
    bf = lambda a: a.astype(jnp.bfloat16).astype(jnp.float32)
    h1 = jnp.maximum(bf(x) @ bf(p["w1"]) + p["b1"], 0.0)
    h2 = jnp.maximum(bf(h1) @ bf(p["w2"]) + p["b2"], 0.0)
    logits = bf(h2) @ bf(p["w3"]) + p["b3"]
    return jax.nn.softmax(logits, axis=-1)


if __name__ == "__main__":
    num_class, num_mrmr, num_hidden = 4, 16, 32
    batch = 20

    key = jax.random.PRNGKey(0)
    kx, kp = jax.random.split(key)
    x = jax.random.normal(kx, (batch, num_mrmr), jnp.float32)
    params = init_params(kp, num_class, num_mrmr, num_hidden)
    w_packed, b_packed = pack_params(params)

    ref = _reference_forward(x, params)

    # Multi-step grid path (TB=8 -> grid=(3,), exercises batch padding 20 -> 24).
    out_tiled = mrmr_classifier_forward(x, w_packed, b_packed,
                                        num_class=num_class, block_b=8)
    out_tiled = jax.block_until_ready(out_tiled)

    # Default single-step path (whole batch in one block).
    out_full = mrmr_classifier_forward(x, w_packed, b_packed, num_class=num_class)
    out_full = jax.block_until_ready(out_full)

    for out in (out_tiled, out_full):
        assert out.shape == (batch, num_class)
        assert jnp.allclose(out, ref, atol=2e-3), "mismatch vs reference"
        assert jnp.allclose(jnp.sum(out, axis=-1), 1.0, atol=2e-3), \
            "softmax rows must sum to 1"

    print("KERNEL_OK")
</pallas_src>

<mosaic_0001>
module attributes {stable_mosaic.version = 11 : i64} {
  func.func @_mlp_softmax_kernel(%arg0: i32, %arg1: memref<8x16xbf16, #tpu.memory_space<vmem>>, %arg2: memref<272x128xbf16, #tpu.memory_space<vmem>>, %arg3: memref<8x128xf32, #tpu.memory_space<vmem>>, %arg4: memref<8x128xf32, #tpu.memory_space<vmem>>) attributes {dimension_semantics = [#tpu.dimension_semantics<parallel>], iteration_bounds = array<i64: 3>, scalar_prefetch = 0 : i64, scratch_operands = 0 : i64, tpu.core_type = #tpu.core_type<tc>, window_params = [{transform_indices = @transform_0, window_bounds = array<i64: 8, 16>}, {pipeline_mode = #tpu.pipeline_mode<synchronous>, transform_indices = @transform_1, window_bounds = array<i64: 272, 128>}, {pipeline_mode = #tpu.pipeline_mode<synchronous>, transform_indices = @transform_2, window_bounds = array<i64: 8, 128>}, {transform_indices = @transform_3, window_bounds = array<i64: 8, 128>}]} {
    %c0 = arith.constant 0 : index
    %c0_0 = arith.constant 0 : index
    %0 = vector.load %arg1[%c0, %c0_0] : memref<8x16xbf16, #tpu.memory_space<vmem>>, vector<8x16xbf16>
    %c0_1 = arith.constant 0 : index
    %c0_2 = arith.constant 0 : index
    %1 = vector.load %arg2[%c0_1, %c0_2] : memref<272x128xbf16, #tpu.memory_space<vmem>>, vector<16x128xbf16>
    %c16 = arith.constant 16 : index
    %c0_3 = arith.constant 0 : index
    %2 = vector.load %arg2[%c16, %c0_3] : memref<272x128xbf16, #tpu.memory_space<vmem>>, vector<128x128xbf16>
    %c144 = arith.constant 144 : index
    %c0_4 = arith.constant 0 : index
    %3 = vector.load %arg2[%c144, %c0_4] : memref<272x128xbf16, #tpu.memory_space<vmem>>, vector<128x128xbf16>
    %c0_5 = arith.constant 0 : index
    %c0_6 = arith.constant 0 : index
    %4 = vector.load %arg3[%c0_5, %c0_6] : memref<8x128xf32, #tpu.memory_space<vmem>>, vector<8x128xf32>
    %5 = vector.extract_strided_slice %4 {offsets = [0, 0], sizes = [1, 128], strides = [1, 1]} : vector<8x128xf32> to vector<1x128xf32>
    %6 = vector.extract_strided_slice %4 {offsets = [1, 0], sizes = [1, 128], strides = [1, 1]} : vector<8x128xf32> to vector<1x128xf32>
    %7 = vector.extract_strided_slice %4 {offsets = [2, 0], sizes = [1, 128], strides = [1, 1]} : vector<8x128xf32> to vector<1x128xf32>
    %cst = arith.constant dense<0.000000e+00> : vector<8x128xf32>
    %8 = tpu.matmul %0, %1, %cst {dimension_numbers = #tpu.dot_dimension_numbers<[1], [0], [0], [1], [0, 0, 1, 1], [], []>} : vector<8x16xbf16>, vector<16x128xbf16>, vector<8x128xf32> -> vector<8x128xf32>
    %9 = vector.broadcast %5 : vector<1x128xf32> to vector<8x128xf32>
    %10 = arith.addf %8, %9 : vector<8x128xf32>
    %cst_7 = arith.constant 0.000000e+00 : f32
    %11 = vector.broadcast %cst_7 : f32 to vector<8x128xf32>
    %12 = arith.maximumf %10, %11 : vector<8x128xf32>
    %13 = arith.truncf %12 : vector<8x128xf32> to vector<8x128xbf16>
    %cst_8 = arith.constant dense<0.000000e+00> : vector<8x128xf32>
    %14 = tpu.matmul %13, %2, %cst_8 {dimension_numbers = #tpu.dot_dimension_numbers<[1], [0], [0], [1], [0, 0, 1, 1], [], []>} : vector<8x128xbf16>, vector<128x128xbf16>, vector<8x128xf32> -> vector<8x128xf32>
    %15 = vector.broadcast %6 : vector<1x128xf32> to vector<8x128xf32>
    %16 = arith.addf %14, %15 : vector<8x128xf32>
    %cst_9 = arith.constant 0.000000e+00 : f32
    %17 = vector.broadcast %cst_9 : f32 to vector<8x128xf32>
    %18 = arith.maximumf %16, %17 : vector<8x128xf32>
    %19 = arith.truncf %18 : vector<8x128xf32> to vector<8x128xbf16>
    %cst_10 = arith.constant dense<0.000000e+00> : vector<8x128xf32>
    %20 = tpu.matmul %19, %3, %cst_10 {dimension_numbers = #tpu.dot_dimension_numbers<[1], [0], [0], [1], [0, 0, 1, 1], [], []>} : vector<8x128xbf16>, vector<128x128xbf16>, vector<8x128xf32> -> vector<8x128xf32>
    %21 = vector.broadcast %7 : vector<1x128xf32> to vector<8x128xf32>
    %22 = arith.addf %20, %21 : vector<8x128xf32>
    %cst_11 = arith.constant dense<0xFF800000> : vector<8xf32>
    %23 = vector.multi_reduction <maximumf>, %22, %cst_11 [1] : vector<8x128xf32> to vector<8xf32>
    %24 = vector.shape_cast %23 : vector<8xf32> to vector<8x1xf32>
    %25 = vector.broadcast %24 : vector<8x1xf32> to vector<8x128xf32>
    %26 = arith.subf %22, %25 : vector<8x128xf32>
    %27 = math.exp %26 : vector<8x128xf32>
    %cst_12 = arith.constant dense<0.000000e+00> : vector<8xf32>
    %28 = vector.multi_reduction <add>, %27, %cst_12 [1] : vector<8x128xf32> to vector<8xf32>
    %29 = vector.shape_cast %28 : vector<8xf32> to vector<8x1xf32>
    %30 = tpu.reciprocal %29 {approx = true} : vector<8x1xf32> -> vector<8x1xf32>
    %31 = vector.broadcast %30 : vector<8x1xf32> to vector<8x128xf32>
    %32 = arith.mulf %27, %31 : vector<8x128xf32>
    %c0_13 = arith.constant 0 : index
    %c0_14 = arith.constant 0 : index
    %33 = vector.load %arg4[%c0_13, %c0_14] : memref<8x128xf32, #tpu.memory_space<vmem>>, vector<8x128xf32>
    tpu.vector_store %arg4[%c0_13, %c0_14], %32 {strides = array<i32>} : memref<8x128xf32, #tpu.memory_space<vmem>>, vector<8x128xf32>,
    return
  }
  func.func @transform_0(%arg0: i32) -> (i32, i32) {
    %c0_i32 = arith.constant 0 : i32
    %c0_i32_0 = arith.constant 0 : i32
    return %arg0, %c0_i32 : i32, i32
  }
  func.func @transform_1(%arg0: i32) -> (i32, i32) {
    %c0_i32 = arith.constant 0 : i32
    %c0_i32_0 = arith.constant 0 : i32
    %c0_i32_1 = arith.constant 0 : i32
    return %c0_i32, %c0_i32_0 : i32, i32
  }
  func.func @transform_2(%arg0: i32) -> (i32, i32) {
    %c0_i32 = arith.constant 0 : i32
    %c0_i32_0 = arith.constant 0 : i32
    %c0_i32_1 = arith.constant 0 : i32
    return %c0_i32, %c0_i32_0 : i32, i32
  }
  func.func @transform_3(%arg0: i32) -> (i32, i32) {
    %c0_i32 = arith.constant 0 : i32
    %c0_i32_0 = arith.constant 0 : i32
    return %arg0, %c0_i32 : i32, i32
  }
}

</mosaic_0001>

<bundles_post_ra>
// kernel: mrmr_classifier_forward.1
= control target key start
LH: loop header
LB: loop body
LE: loop exit
PB: predicated region body
PF: predicated region fallthrough
CT: control target
= control target key end

     0   :  { %8 = vsyncpa [#allocation3], 0  ;;  %s739_s12 = smov 0   ;;  %s825_s0 = inlined_call_operand.vmem [shape: bf16[24,16], index: 0, kind: input, shape index: {}]   ;;  %s826_s1 = inlined_call_operand.hbm [shape: bf16[272,128], index: 1, kind: input, shape index: {}]   ;;  %s827_s2 = inlined_call_operand.vmem [shape: f32[8,128], index: 2, kind: input, shape index: {}]   ;;  %s828_s3 = inlined_call_operand.vmem [shape: f32[24,128], index: 3, kind: output, shape index: {}]  }
   0x1 LB: > { %s745_s13 = sadd.s32 4294967295, %s712_s12   ;;  %p537_p0 = scmp.ge.s32.totalorder %s712_s12, 1  ;;  %s712_s12 = sphi %s739_s12, %s14_s12  }
   0x2   : > { %p113_p1 = scmp.lt.s32.totalorder %s712_s12, 4  ;;  %s714_s14 = smov [#allocation2]  }
   0x3   : > { %s125_s15 = sshll.u32 %s714_s14, 4  ;;  %p829_p3 = scmp.eq.s32.totalorder %s745_s13, 0  ;;  %s126_s15 = int_to_ptr.vmem [resolvable:$true] %s125_s15 }
   0x4   : > { %p749_p2 = pnand %p537_p0, %p113_p1  ;;  %s674_s20 = scalar_lea.hbm %s826_s1, 2176 }
   0x5   : > { %p675_p6 = scmp.ne.s32.totalorder %s826_s1, %s674_s20  ;;  %p681_p10 = scmp.lt.u32.totalorder %s674_s20, %s826_s1 }
   0x6   : > { %s831_s16 = scalar_select %p749_p2, 1, 0 }
   0x7   : > { %p634_p4 = pneg %p749_p2 }
   0x9   : > { %p758_p5 = pnand %p829_p3, %p634_p4 }
   0xb   : > { %p676_p7 = pneg %p758_p5 }
   0xd   : > { %p677_p8 = pnand %p676_p7, %p675_p6 }
   0xf   : > { %p678_p9 = pneg %p677_p8 }
  0x11   : > { %p683_p11 = pnand %p681_p10, %p678_p9 }
  0x13   : > { %686 = shalt.err (!%p683_p11)
}
  0x14   : > { %s687_s25 = scalar_lea.vmem %s126_s15, 2176  ;;  %p695_p1 = scmp.lt.s32.totalorder %s126_s15, %s126_s15 }
  0x15   : > { %p688_p12 = scmp.ne.s32.totalorder %s126_s15, %s687_s25  ;;  %p696_p4 = scmp.lt.s32.totalorder %s687_s25, %s687_s25 }
  0x17   : > { %p690_p13 = pnand %p688_p12, %p676_p7  ;;  %p697_p3 = por %p696_p4, %p695_p1 }
  0x19   : > { %p691_p0 = pneg %p690_p13 }
  0x1b   : > { %p698_p2 = pnand %p697_p3, %p691_p0 }
  0x1d   : > { %701 = shalt.err (!%p698_p2)
}
  0x1e   : > { %s715_s26 = smov 64   ;;  %s716_s27 = smov 4  }
  0x1f   : > { %637 = dma.hbm_to_vmem [thread:$0]  (!%p758_p5), %s826_s1, 2176, %s126_s15, [#allocation3], %s715_s26, %s715_s26, %s716_s27  }
  0x20   : > { %p833_p6 = scmp.ne.s32.totalorder %s831_s16, 0 }
  0x21   : > { %p834_p8 = scmp.eq.s32.totalorder (!%p833_p6), %s745_s13, 0 }
  0x22   : > { %151 = sbr.rel (%p833_p6) target bundleno = 1011 (0x3f3), region = 32 }
  0x29   : > { %707 = dma.done.wait (%p834_p8), [#allocation3], 2176   ;;  %p835_p7 = pmov %p834_p8 }
  0x2a   : > { %p173_p2 = scmp.lt.s32.totalorder %s745_s13, 2  ;;  %v717_v0 = vmov 0.0   ;;  %vm718_vm0 = vmmov 0   ;;  %v653_v1 = vld [vmem:[#allocation2] sm:$0xff]   ;;  %vm228_vm1 = vcmask 130048   ;;  %v654_v3 = vld [vmem:[#allocation2 + $0x8] sm:$0xff]   ;;  %v218_v17 = vlaneseq }
  0x2b   : > { %709 = vsyncadd (%p835_p7), [#allocation3], 4294965120  ;;  %584 = vmatprep.subr.bf16.mxu0 %v717_v0  ;;  %586 = vmatprep.mubr.msk.bf16.mxu0 %vm718_vm0, %v717_v0  ;;  %v655_v4 = vld [vmem:[#allocation2 + $0x10] sm:$0xff]   ;;  %v656_v5 = vld [vmem:[#allocation2 + $0x18] sm:$0xff]  }
  0x2c   : > { %s837_s13 = smov (!%p173_p2, %s745_s13), 2  ;;  %590 = vmatprep.subr.bf16.mxu1 %v717_v0  ;;  %606 = vmatprep.mubr.msk.bf16.mxu1 %vm718_vm0, %v717_v0  ;;  %v657_v6 = vld [vmem:[#allocation2 + $0x20] sm:$0xff]   ;;  %v658_v7 = vld [vmem:[#allocation2 + $0x28] sm:$0xff]   ;;  %v659_v8 = vld [vmem:[#allocation2 + $0x30] sm:$0xff]   ;;  %v219_v18 = vshrl.u32 %v218_v17, 7 }
  0x2d   : > { %s542_s30 = sshll.u32 %s837_s13, 2  ;;  %585 = vmatpush3.bf16.msra.mxu0 %v653_v1  ;;  %591 = vmatpush3.bf16.msra.mxu1 %v654_v3  ;;  %v660_v9 = vld [vmem:[#allocation2 + $0x38] sm:$0xff]   ;;  %v661_v10 = vld [vmem:[#allocation2 + $0x40] sm:$0xff]   ;;  %v662_v11 = vld [vmem:[#allocation2 + $0x48] sm:$0xff]   ;;  %s543_s9 = sshll.u32 %s837_s13, 3 }
  0x2e   : > { %s176_s6 = scalar_lea.vmem %s825_s0, %s542_s30  ;;  %610 = vmatprep.subr.bf16.mxu0 %v717_v0  ;;  %592 = vmatprep.subr.bf16.mxu1 %v717_v0  ;;  %v663_v12 = vld [vmem:[#allocation2 + $0x50] sm:$0xff]   ;;  %v664_v13 = vld [vmem:[#allocation2 + $0x58] sm:$0xff]   ;;  %v665_v14 = vld [vmem:[#allocation2 + $0x60] sm:$0xff]   ;;  %v220_v19 = vsub.s32 0, %v219_v18  ;;  %v276_v31 = vsub.s32 1, %v219_v18  ;;  %v370_v40 = vsub.s32 2, %v219_v18  ;;  %s180_s14 = scalar_lea.vmem %s828_s3, %s543_s9 }
  0x2f   : > { %v182_v2 = vld [vmem:[%s176_s6] sm:$0xf]  ;;  %v666_v15 = vld [vmem:[#allocation2 + $0x68] sm:$0xff]   ;;  %v667_v16 = vld [vmem:[#allocation2 + $0x70] sm:$0xff]  }
  0x30   : > { %587 = vmatmul.mubr.msk.bf16.vlgmr.msra.gmra.mrb[0].mxu0 %vm228_vm1, %v182_v2  ;;  %v217_v20 = vld [vmem:[%s827_s2] sm:$0xff]  ;;  %v668_v29 = vld [vmem:[#allocation2 + $0x78] sm:$0xff]  }
  0x31   : > { %626 = vmatprep.mubr.msk.bf16.mxu0 %vm718_vm0, %v717_v0  ;;  %593 = vmatpush3.bf16.msra.mxu1 %v655_v4  ;;  %v221_v21 = vrot.slane %v217_v20, %v220_v19  ;;  %v669_v30 = vld [vmem:[#allocation2 + $0x80] sm:$0xff]   ;;  %v277_v32 = vrot.slane %v217_v20, %v276_v31  ;;  %v371_v41 = vrot.slane %v217_v20, %v370_v40 }
  0x32   : > { %594 = vmatprep.subr.bf16.mxu1 %v717_v0  ;;  %611 = vmatpush3.bf16.msra.mxu0 %v662_v11 }
  0x33   : > { %612 = vmatprep.subr.bf16.mxu0 %v717_v0 }
  0x35   : > { %595 = vmatpush3.bf16.msra.mxu1 %v656_v5 }
  0x36   : > { %596 = vmatprep.subr.bf16.mxu1 %v717_v0  ;;  %613 = vmatpush3.bf16.msra.mxu0 %v663_v12 }
  0x37   : > { %614 = vmatprep.subr.bf16.mxu0 %v717_v0 }
  0x39   : > { %597 = vmatpush3.bf16.msra.mxu1 %v657_v6 }
  0x3a   : > { %598 = vmatprep.subr.bf16.mxu1 %v717_v0  ;;  %615 = vmatpush3.bf16.msra.mxu0 %v664_v13 }
  0x3b   : > { %616 = vmatprep.subr.bf16.mxu0 %v717_v0 }
  0x3d   : > { %599 = vmatpush3.bf16.msra.mxu1 %v658_v7 }
  0x3e   : > { %600 = vmatprep.subr.bf16.mxu1 %v717_v0  ;;  %617 = vmatpush3.bf16.msra.mxu0 %v665_v14 }
  0x3f   : > { %618 = vmatprep.subr.bf16.mxu0 %v717_v0 }
  0x41   : > { %601 = vmatpush3.bf16.msra.mxu1 %v659_v8 }
  0x42   : > { %602 = vmatprep.subr.bf16.mxu1 %v717_v0  ;;  %619 = vmatpush3.bf16.msra.mxu0 %v666_v15 }
  0x43   : > { %620 = vmatprep.subr.bf16.mxu0 %v717_v0 }
  0x45   : > { %603 = vmatpush3.bf16.msra.mxu1 %v660_v9 }
  0x46   : > { %604 = vmatprep.subr.bf16.mxu1 %v717_v0  ;;  %621 = vmatpush3.bf16.msra.mxu0 %v667_v16 }
  0x47   : > { %622 = vmatprep.subr.bf16.mxu0 %v717_v0 }
  0x49   : > { %605 = vmatpush3.bf16.msra.mxu1 %v661_v10 }
  0x4a   : > { %623 = vmatpush3.bf16.msra.mxu0 %v668_v29 }
  0x4b   : > { %624 = vmatprep.subr.bf16.mxu0 %v717_v0 }
  0x4e   : > { %625 = vmatpush3.bf16.msra.mxu0 %v669_v30 }
 0x103   : > { %v266_v22 = vpop.f32.mrb[0].mxu0 }
 0x104   : > { %v267_v23 = vadd.f32 %v266_v22, %v221_v21  ;;  %v588_v24 = vpop.f32.mrb[1].mxu0 }
 0x105   : > { %v269_v25 = vpop.f32.mrb[2].mxu0 }
 0x106   : > { %v272_v26 = vmax.f32 %v267_v23, 0.0  ;;  %v589_v27 = vpop.f32.mrb[3].mxu0 }
 0x108   : > { %v273_v28 = vpack.c.bf16 %v272_v26, %v272_v26 }
 0x10a   : > { %607 = vmatmul.mubr.bf16.vlgmr.msra.gmra.mrb[0].mxu1 %v273_v28 }
 0x1dd   : > { %v360_v33 = vpop.f32.mrb[0].mxu1 }
 0x1de   : > { %v361_v34 = vadd.f32 %v360_v33, %v277_v32  ;;  %v608_v35 = vpop.f32.mrb[1].mxu1 }
 0x1df   : > { %v363_v36 = vpop.f32.mrb[2].mxu1 }
 0x1e0   : > { %v366_v37 = vmax.f32 %v361_v34, 0.0  ;;  %v609_v38 = vpop.f32.mrb[3].mxu1 }
 0x1e2   : > { %v367_v39 = vpack.c.bf16 %v366_v37, %v366_v37 }
 0x1e4   : > { %627 = vmatmul.mubr.bf16.vlgmr.msra.gmra.mrb[4].mxu0 %v367_v39 }
 0x2b7   : > { %v454_v42 = vpop.f32.mrb[4].mxu0 }
 0x2b8   : > { %v455_v43 = vadd.f32 %v454_v42, %v371_v41  ;;  %v628_v44 = vpop.f32.mrb[5].mxu0 }
 0x2b9   : > { %v457_v45 = vpop.f32.mrb[6].mxu0 }
 0x2ba   : > { %460 = vmax.xlane.f32.xlu0 %v455_v43  ;;  %v629_v46 = vpop.f32.mrb[7].mxu0 }
 0x347   : > { %v461_v47 = vpop.xlane.xlu0 %460 }
 0x348   : > { %v462_v48 = vsub.f32 %v455_v43, %v461_v47 }
 0x34a   : > { %v463_v49 = vmul.f32 1.442695, %v462_v48 }
 0x34c   : > { %670 = vpow2.f32 %v463_v49 }
 0x356   : > { %v671_v50 = vpop.eup %670 }
 0x357   : > { %465 = vadd.xlane.f32.xlu0 %v671_v50 }
 0x3e4   : > { %v466_v51 = vpop.xlane.xlu0 %465 }
 0x3e5   : > { %672 = vrcp.f32 %v466_v51 }
 0x3ef   : > { %v673_v52 = vpop.eup %672 }
 0x3f0   : > { %v468_v53 = vmul.f32 %v673_v52, %v671_v50 }
 0x3f2   : > { %469 = vst [vmem:[%s180_s14] sm:$0xff] %v468_v53 }
 0x3f3 PF: > { %s14_s12 = sadd.s32 1, %s712_s12  }
 0x3f4   : > { %p11_p3 = scmp.ge.s32.totalorder %s14_s12, 5  }
 0x3f6   :  { %13 = sbr.rel (!%p11_p3) target bundleno = 1 (0x1), region = 67 }
 0x3fd   :  { %489 = vsyncpa [#allocation3], 1 }
 0x3fe   :  { %491 = vsyncpa [#allocation3 + $0x1], 1 }

</bundles_post_ra>
